<compile_context>
chip_gen: v7x
topology: tpu7x:2x2x1
jax: 0.10.0
libtpu: 0.0.40
codegen_flags: <defaults>
</compile_context>

<pallas_src>
import math
from functools import partial

import jax
import jax.numpy as jnp
from jax.experimental import pallas as pl
from jax.experimental.pallas import tpu as pltpu

HIDDEN = 40      # hidden width of the module (fixed by the PyTorch spec)
HP = 128         # hidden width padded to one full 128-lane vreg
OUTP = 128       # output width padded to 128 lanes (lane-dense store)


def _round_up(n, m):
    return (n + m - 1) // m * m


def make_network(input_dim, output_dim, block_b=256):
    """Builds (pack_params, forward) for the 3-layer MLP with padded layout."""
    din_p = _round_up(input_dim, 8)          # sublane-aligned input width
    # Row offsets inside the packed parameter slab (all multiples of 8).
    o_w1 = 0
    o_b1 = o_w1 + din_p
    o_w2 = o_b1 + 8
    o_b2 = o_w2 + HP
    o_w3 = o_b2 + 8
    o_b3 = o_w3 + HP
    n_rows = o_b3 + 8                        # total slab rows

    def kernel(x_ref, p_ref, o_ref):
        # x_ref: (TB, din_p)   p_ref: (n_rows, 128)   o_ref: (TB, 128)
        x = x_ref[...]
        # Layer 1: (TB, din_p) @ (din_p, 128) + b1, ReLU
        h = jnp.dot(x, p_ref[o_w1:o_w1 + din_p, :],
                    preferred_element_type=jnp.float32)
        h = jnp.maximum(h + p_ref[o_b1:o_b1 + 1, :], 0.0)
        # Layer 2: (TB, 128) @ (128, 128) + b2, ReLU
        h = jnp.dot(h, p_ref[o_w2:o_w2 + HP, :],
                    preferred_element_type=jnp.float32)
        h = jnp.maximum(h + p_ref[o_b2:o_b2 + 1, :], 0.0)
        # Layer 3: (TB, 128) @ (128, 128) + b3   (lane-dense padded output)
        out = jnp.dot(h, p_ref[o_w3:o_w3 + HP, :],
                      preferred_element_type=jnp.float32)
        o_ref[...] = (out + p_ref[o_b3:o_b3 + 1, :]).astype(o_ref.dtype)

    def pack_params(w1, b1, w2, b2, w3, b3):
        """w*: (in, out) f32, b*: (out,) or (1, out) f32 -> (n_rows, 128) slab.

        Padding with zeros is exact: padded hidden lanes stay 0 through
        bias-add (0) and ReLU, and padded weight rows/cols contribute 0.
        """
        p = jnp.zeros((n_rows, HP), jnp.float32)
        p = p.at[o_w1:o_w1 + w1.shape[0], :w1.shape[1]].set(w1)
        p = p.at[o_b1, :b1.size].set(jnp.ravel(b1))
        p = p.at[o_w2:o_w2 + w2.shape[0], :w2.shape[1]].set(w2)
        p = p.at[o_b2, :b2.size].set(jnp.ravel(b2))
        p = p.at[o_w3:o_w3 + w3.shape[0], :w3.shape[1]].set(w3)
        p = p.at[o_b3, :b3.size].set(jnp.ravel(b3))
        return p

    @jax.jit
    def forward(x, packed):
        """x: (B, input_dim) f32, packed: (n_rows, 128) f32 -> (B, output_dim)."""
        B = x.shape[0]
        tb = min(block_b, _round_up(B, 8))        # batch tile (multiple of 8)
        b_pad = _round_up(B, tb)
        xp = jnp.zeros((b_pad, din_p), jnp.float32).at[:B, :input_dim].set(x)
        out = pl.pallas_call(
            kernel,
            out_shape=jax.ShapeDtypeStruct((b_pad, OUTP), jnp.float32),
            grid=(b_pad // tb,),
            in_specs=[
                pl.BlockSpec((tb, din_p), lambda i: (i, 0)),      # x tile
                pl.BlockSpec((n_rows, HP), lambda i: (0, 0)),     # resident params
            ],
            out_specs=pl.BlockSpec((tb, OUTP), lambda i: (i, 0)), # lane-dense out
            compiler_params=pltpu.CompilerParams(
                dimension_semantics=("parallel",)),
        )(xp, packed)
        return out[:B, :output_dim]

    return pack_params, forward


def init_linear(key, fan_in, fan_out):
    """PyTorch nn.Linear default init: U(-1/sqrt(fan_in), 1/sqrt(fan_in)).
    Returned weight is (fan_in, fan_out) (transposed vs PyTorch storage)."""
    kw, kb = jax.random.split(key)
    bound = 1.0 / math.sqrt(fan_in)
    w = jax.random.uniform(kw, (fan_in, fan_out), jnp.float32, -bound, bound)
    b = jax.random.uniform(kb, (fan_out,), jnp.float32, -bound, bound)
    return w, b


def reference_forward(x, w1, b1, w2, b2, w3, b3):
    h1 = jnp.maximum(x @ w1 + b1, 0.0)
    h2 = jnp.maximum(h1 @ w2 + b2, 0.0)
    return h2 @ w3 + b3


if __name__ == "__main__":
    # Small, DQN-like shapes: batch=8, state dim=8, action dim=4, hidden=40.
    B, input_dim, output_dim = 8, 8, 4

    key = jax.random.PRNGKey(0)
    kx, k1, k2, k3 = jax.random.split(key, 4)

    x = jax.random.normal(kx, (B, input_dim), jnp.float32)
    w1, b1 = init_linear(k1, input_dim, HIDDEN)
    w2, b2 = init_linear(k2, HIDDEN, HIDDEN)
    w3, b3 = init_linear(k3, HIDDEN, output_dim)

    pack_params, forward = make_network(input_dim, output_dim)
    packed = jax.block_until_ready(pack_params(w1, b1, w2, b2, w3, b3))  # once

    out = forward(x, packed)
    out = jax.block_until_ready(out)

    ref = reference_forward(x, w1, b1, w2, b2, w3, b3)
    assert out.shape == (B, output_dim)
    assert jnp.allclose(out, ref, atol=1e-5, rtol=1e-5), "mismatch vs JAX reference"

    # Also exercise a training-sized replay batch (multiple grid steps).
    xb = jax.random.normal(kx, (1024, input_dim), jnp.float32)
    outb = jax.block_until_ready(forward(xb, packed))
    refb = reference_forward(xb, w1, b1, w2, b2, w3, b3)
    assert outb.shape == (1024, output_dim)
    assert jnp.allclose(outb, refb, atol=1e-5, rtol=1e-5), "batch mismatch"

    print("KERNEL_OK")
</pallas_src>

<mosaic_0001>
module attributes {stable_mosaic.version = 11 : i64} {
  func.func @kernel(%arg0: i32, %arg1: memref<8x8xf32, #tpu.memory_space<vmem>>, %arg2: memref<288x128xf32, #tpu.memory_space<vmem>>, %arg3: memref<8x128xf32, #tpu.memory_space<vmem>>) attributes {dimension_semantics = [#tpu.dimension_semantics<parallel>], iteration_bounds = array<i64: 1>, scalar_prefetch = 0 : i64, scratch_operands = 0 : i64, tpu.core_type = #tpu.core_type<tc>, window_params = [{transform_indices = @transform_0, window_bounds = array<i64: 8, 8>}, {pipeline_mode = #tpu.pipeline_mode<synchronous>, transform_indices = @transform_1, window_bounds = array<i64: 288, 128>}, {transform_indices = @transform_2, window_bounds = array<i64: 8, 128>}]} {
    %c0 = arith.constant 0 : index
    %c0_0 = arith.constant 0 : index
    %0 = vector.load %arg1[%c0, %c0_0] : memref<8x8xf32, #tpu.memory_space<vmem>>, vector<8x8xf32>
    %c0_1 = arith.constant 0 : index
    %c0_2 = arith.constant 0 : index
    %1 = vector.load %arg2[%c0_1, %c0_2] : memref<288x128xf32, #tpu.memory_space<vmem>>, vector<8x128xf32>
    %cst = arith.constant dense<0.000000e+00> : vector<8x128xf32>
    %2 = tpu.matmul %0, %1, %cst {dimension_numbers = #tpu.dot_dimension_numbers<[1], [0], [0], [1], [0, 0, 1, 1], [], []>} : vector<8x8xf32>, vector<8x128xf32>, vector<8x128xf32> -> vector<8x128xf32>
    %c8 = arith.constant 8 : index
    %c0_3 = arith.constant 0 : index
    %3 = vector.load %arg2[%c8, %c0_3] : memref<288x128xf32, #tpu.memory_space<vmem>>, vector<1x128xf32>
    %4 = vector.broadcast %3 : vector<1x128xf32> to vector<8x128xf32>
    %5 = arith.addf %2, %4 : vector<8x128xf32>
    %cst_4 = arith.constant 0.000000e+00 : f32
    %6 = vector.broadcast %cst_4 : f32 to vector<8x128xf32>
    %7 = arith.maximumf %5, %6 : vector<8x128xf32>
    %c16 = arith.constant 16 : index
    %c0_5 = arith.constant 0 : index
    %8 = vector.load %arg2[%c16, %c0_5] : memref<288x128xf32, #tpu.memory_space<vmem>>, vector<128x128xf32>
    %cst_6 = arith.constant dense<0.000000e+00> : vector<8x128xf32>
    %9 = tpu.matmul %7, %8, %cst_6 {dimension_numbers = #tpu.dot_dimension_numbers<[1], [0], [0], [1], [0, 0, 1, 1], [], []>} : vector<8x128xf32>, vector<128x128xf32>, vector<8x128xf32> -> vector<8x128xf32>
    %c144 = arith.constant 144 : index
    %c0_7 = arith.constant 0 : index
    %10 = vector.load %arg2[%c144, %c0_7] : memref<288x128xf32, #tpu.memory_space<vmem>>, vector<1x128xf32>
    %11 = vector.broadcast %10 : vector<1x128xf32> to vector<8x128xf32>
    %12 = arith.addf %9, %11 : vector<8x128xf32>
    %cst_8 = arith.constant 0.000000e+00 : f32
    %13 = vector.broadcast %cst_8 : f32 to vector<8x128xf32>
    %14 = arith.maximumf %12, %13 : vector<8x128xf32>
    %c152 = arith.constant 152 : index
    %c0_9 = arith.constant 0 : index
    %15 = vector.load %arg2[%c152, %c0_9] : memref<288x128xf32, #tpu.memory_space<vmem>>, vector<128x128xf32>
    %cst_10 = arith.constant dense<0.000000e+00> : vector<8x128xf32>
    %16 = tpu.matmul %14, %15, %cst_10 {dimension_numbers = #tpu.dot_dimension_numbers<[1], [0], [0], [1], [0, 0, 1, 1], [], []>} : vector<8x128xf32>, vector<128x128xf32>, vector<8x128xf32> -> vector<8x128xf32>
    %c280 = arith.constant 280 : index
    %c0_11 = arith.constant 0 : index
    %17 = vector.load %arg2[%c280, %c0_11] : memref<288x128xf32, #tpu.memory_space<vmem>>, vector<1x128xf32>
    %18 = vector.broadcast %17 : vector<1x128xf32> to vector<8x128xf32>
    %19 = arith.addf %16, %18 : vector<8x128xf32>
    %c0_12 = arith.constant 0 : index
    %c0_13 = arith.constant 0 : index
    %20 = vector.load %arg3[%c0_12, %c0_13] : memref<8x128xf32, #tpu.memory_space<vmem>>, vector<8x128xf32>
    tpu.vector_store %arg3[%c0_12, %c0_13], %19 {strides = array<i32>} : memref<8x128xf32, #tpu.memory_space<vmem>>, vector<8x128xf32>,
    return
  }
  func.func @transform_0(%arg0: i32) -> (i32, i32) {
    %c0_i32 = arith.constant 0 : i32
    %c0_i32_0 = arith.constant 0 : i32
    return %arg0, %c0_i32 : i32, i32
  }
  func.func @transform_1(%arg0: i32) -> (i32, i32) {
    %c0_i32 = arith.constant 0 : i32
    %c0_i32_0 = arith.constant 0 : i32
    %c0_i32_1 = arith.constant 0 : i32
    return %c0_i32, %c0_i32_0 : i32, i32
  }
  func.func @transform_2(%arg0: i32) -> (i32, i32) {
    %c0_i32 = arith.constant 0 : i32
    %c0_i32_0 = arith.constant 0 : i32
    return %arg0, %c0_i32 : i32, i32
  }
}

</mosaic_0001>

<bundles_post_ra>
// kernel: forward.1
= control target key start
LH: loop header
LB: loop body
LE: loop exit
PB: predicated region body
PF: predicated region fallthrough
CT: control target
= control target key end

     0   :  { %7 = vsyncpa [#allocation3], 0  ;;  %s602_s0 = inlined_call_operand.hbm [shape: f32[8,8], index: 0, kind: input, shape index: {}]   ;;  %s603_s1 = inlined_call_operand.hbm [shape: f32[288,128], index: 1, kind: input, shape index: {}]   ;;  %s604_s2 = inlined_call_operand.vmem [shape: f32[8,128], index: 2, kind: output, shape index: {}]  }
   0x1   :  { %8 = vsyncpa [#allocation5], 0  ;;  %s527_s9 = smov [#allocation2]   ;;  %s528_s11 = smov [#allocation4]  }
   0x2   :  { %s15_s10 = sshll.u32 %s527_s9, 4  ;;  %s24_s12 = sshll.u32 %s528_s11, 4  ;;  %s16_s10 = int_to_ptr.vmem [resolvable:$true] %s15_s10  ;;  %s549_s12 = int_to_ptr.vmem [resolvable:$true] %s24_s12 }
   0x3   :  { %s479_s15 = scalar_lea.hbm %s602_s0, 128 }
   0x4   :  { %p480_p0 = scmp.ne.s32.totalorder %s602_s0, %s479_s15  ;;  %p483_p1 = scmp.lt.u32.totalorder %s479_s15, %s602_s0 }
   0x6   :  { %p485_p2 = pnand %p483_p1, %p480_p0 }
   0x8   :  { %488 = shalt.err (!%p485_p2)
}
   0x9   :  { %s489_s20 = scalar_lea.vmem %s16_s10, 128  ;;  %p494_p4 = scmp.lt.s32.totalorder %s16_s10, %s16_s10 }
   0xa   :  { %p490_p3 = scmp.ne.s32.totalorder %s16_s10, %s489_s20  ;;  %p495_p5 = scmp.lt.s32.totalorder %s489_s20, %s489_s20 }
   0xc   :  { %p496_p6 = por %p495_p5, %p494_p4 }
   0xe   :  { %p497_p7 = pnand %p496_p6, %p490_p3 }
  0x10   :  { %500 = shalt.err (!%p497_p7)
}
  0x11   :  { %18 = dma.hbm_to_vmem [thread:$0]  %s602_s0, 128, %s16_s10, [#allocation3]  }
  0x12   :  { %s501_s25 = scalar_lea.hbm %s603_s1, 4608 }
  0x13   :  { %p502_p8 = scmp.ne.s32.totalorder %s603_s1, %s501_s25  ;;  %p505_p9 = scmp.lt.u32.totalorder %s501_s25, %s603_s1 }
  0x15   :  { %p507_p10 = pnand %p505_p9, %p502_p8 }
  0x17   :  { %510 = shalt.err (!%p507_p10)
}
  0x18   :  { %s511_s30 = scalar_lea.vmem %s549_s12, 4608  ;;  %p516_p12 = scmp.lt.s32.totalorder %s549_s12, %s549_s12 }
  0x19   :  { %p512_p11 = scmp.ne.s32.totalorder %s549_s12, %s511_s30  ;;  %p517_p13 = scmp.lt.s32.totalorder %s511_s30, %s511_s30 }
  0x1b   :  { %p518_p0 = por %p517_p13, %p516_p12 }
  0x1d   :  { %p519_p1 = pnand %p518_p0, %p512_p11 }
  0x1f   :  { %522 = shalt.err (!%p519_p1)
}
  0x20   :  { %s529_s0 = smov 128   ;;  %s530_s3 = smov 8  }
  0x21   :  { %30 = dma.hbm_to_vmem [thread:$0]  %s603_s1, 4608, %s549_s12, [#allocation5], %s529_s0, %s529_s0, %s530_s3  }
  0x22   :  { %523 = dma.done.wait [#allocation3], 128  }
  0x23   :  { %524 = vsyncadd [#allocation3], 4294967168 }
  0x24   :  { %525 = dma.done.wait [#allocation5], 4608  }
  0x25   :  { %526 = vsyncadd [#allocation5], 4294962688  ;;  %v531_v0 = vmov 0.0   ;;  %vm532_vm0 = vmmov 0   ;;  %v533_v1 = vmov 0.0|0.0   ;;  %vm44_vm1 = vcmask 64512  }
  0x26   :  { %349 = vmatprep.subr.mxu0 %v531_v0  ;;  %351 = vmatprep.mubr.msk.f32.mxu0 %vm532_vm0, %v531_v0  ;;  %v38_v2 = vld [vmem:[#allocation4] sm:$0xff]  ;;  %v37_v3 = vld [vmem:[#allocation2] sm:$0xff]  ;;  %v119_v4 = vld [vmem:[#allocation4 + $0x10] sm:$0xff] }
  0x27   :  { %424 = vmatprep.subr.bf16.mxu1 %v533_v1  ;;  %386 = vmatprep.mubr.msk.f32.mxu1 %vm532_vm0, %v531_v0  ;;  %v120_v5 = vld [vmem:[#allocation4 + $0x18] sm:$0xff]  ;;  %v121_v6 = vld [vmem:[#allocation4 + $0x20] sm:$0xff]  ;;  %v122_v7 = vld [vmem:[#allocation4 + $0x28] sm:$0xff] }
  0x28   :  { %350 = vmatpush3.msra.mxu0 %v38_v2  ;;  %v425_v8 = vpack.c.bf16 %v120_v5, %v119_v4  ;;  %v428_v9 = vpack.c.bf16 %v122_v7, %v121_v6  ;;  %v123_v10 = vld [vmem:[#allocation4 + $0x30] sm:$0xff]  ;;  %v124_v11 = vld [vmem:[#allocation4 + $0x38] sm:$0xff]  ;;  %v125_v13 = vld [vmem:[#allocation4 + $0x40] sm:$0xff] }
  0x29   :  { %352 = vmatmul.mubr.msk.f32.vlgmr.msra.gmra.mrb[0].mxu0 %vm44_vm1, %v37_v3  ;;  %448 = vmatprep.subr.bf16.mxu0 %v533_v1  ;;  %v431_v12 = vpack.c.bf16 %v124_v11, %v123_v10  ;;  %v126_v14 = vld [vmem:[#allocation4 + $0x48] sm:$0xff]  ;;  %v127_v16 = vld [vmem:[#allocation4 + $0x50] sm:$0xff]  ;;  %v128_v17 = vld [vmem:[#allocation4 + $0x58] sm:$0xff] }
  0x2a   :  { %421 = vmatprep.mubr.msk.f32.mxu0 %vm532_vm0, %v531_v0  ;;  %426 = vmatpush3.bf16.msra.mxu1 %v425_v8  ;;  %v434_v15 = vpack.c.bf16 %v126_v14, %v125_v13  ;;  %v437_v18 = vpack.c.bf16 %v128_v17, %v127_v16  ;;  %v129_v19 = vld [vmem:[#allocation4 + $0x60] sm:$0xff]  ;;  %v130_v20 = vld [vmem:[#allocation4 + $0x68] sm:$0xff]  ;;  %v131_v22 = vld [vmem:[#allocation4 + $0x70] sm:$0xff] }
  0x2b   :  { %427 = vmatprep.subr.bf16.mxu1 %v533_v1  ;;  %v440_v21 = vpack.c.bf16 %v130_v20, %v129_v19  ;;  %v132_v23 = vld [vmem:[#allocation4 + $0x78] sm:$0xff]  ;;  %v133_v25 = vld [vmem:[#allocation4 + $0x80] sm:$0xff]  ;;  %v134_v26 = vld [vmem:[#allocation4 + $0x88] sm:$0xff] }
  0x2c   :  { %v443_v24 = vpack.c.bf16 %v132_v23, %v131_v22  ;;  %v446_v27 = vpack.c.bf16 %v134_v26, %v133_v25  ;;  %v211_v28 = vld [vmem:[#allocation4 + $0x98] sm:$0xff]  ;;  %v212_v29 = vld [vmem:[#allocation4 + $0xa0] sm:$0xff]  ;;  %v213_v30 = vld [vmem:[#allocation4 + $0xa8] sm:$0xff] }
  0x2d   :  { %v449_v31 = vpack.c.bf16 %v212_v29, %v211_v28  ;;  %v214_v32 = vld [vmem:[#allocation4 + $0xb0] sm:$0xff]  ;;  %v215_v34 = vld [vmem:[#allocation4 + $0xb8] sm:$0xff]  ;;  %v216_v35 = vld [vmem:[#allocation4 + $0xc0] sm:$0xff] }
  0x2e   :  { %429 = vmatpush3.bf16.msra.mxu1 %v428_v9  ;;  %v452_v33 = vpack.c.bf16 %v214_v32, %v213_v30  ;;  %v455_v36 = vpack.c.bf16 %v216_v35, %v215_v34  ;;  %v217_v37 = vld [vmem:[#allocation4 + $0xc8] sm:$0xff]  ;;  %v218_v38 = vld [vmem:[#allocation4 + $0xd0] sm:$0xff]  ;;  %v219_v40 = vld [vmem:[#allocation4 + $0xd8] sm:$0xff] }
  0x2f   :  { %430 = vmatprep.subr.bf16.mxu1 %v533_v1  ;;  %450 = vmatpush3.bf16.msra.mxu0 %v449_v31  ;;  %v458_v39 = vpack.c.bf16 %v218_v38, %v217_v37  ;;  %v220_v41 = vld [vmem:[#allocation4 + $0xe0] sm:$0xff]  ;;  %v221_v43 = vld [vmem:[#allocation4 + $0xe8] sm:$0xff]  ;;  %v222_v44 = vld [vmem:[#allocation4 + $0xf0] sm:$0xff] }
  0x30   :  { %451 = vmatprep.subr.bf16.mxu0 %v533_v1  ;;  %v461_v42 = vpack.c.bf16 %v220_v41, %v219_v40  ;;  %v464_v45 = vpack.c.bf16 %v222_v44, %v221_v43  ;;  %v223_v46 = vld [vmem:[#allocation4 + $0xf8] sm:$0xff]  ;;  %v224_v47 = vld [vmem:[#allocation4 + $0x100] sm:$0xff]  ;;  %v309_v49 = vld [vmem:[#allocation4 + $0x8] ss:$0 sm:$0xff] }
  0x31   :  { %v467_v48 = vpack.c.bf16 %v224_v47, %v223_v46  ;;  %v225_v54 = vld [vmem:[#allocation4 + $0x108] sm:$0xff]  ;;  %v226_v55 = vld [vmem:[#allocation4 + $0x110] sm:$0xff]  ;;  %v312_v62 = vld [vmem:[#allocation4 + $0x118] ss:$0 sm:$0xff] }
  0x32   :  { %432 = vmatpush3.bf16.msra.mxu1 %v431_v12  ;;  %v470_v56 = vpack.c.bf16 %v226_v55, %v225_v54  ;;  %v311_v57 = vld [vmem:[#allocation4 + $0x90] ss:$0 sm:$0xff] }
  0x33   :  { %433 = vmatprep.subr.bf16.mxu1 %v533_v1  ;;  %453 = vmatpush3.bf16.msra.mxu0 %v452_v33 }
  0x34   :  { %454 = vmatprep.subr.bf16.mxu0 %v533_v1 }
  0x36   :  { %435 = vmatpush3.bf16.msra.mxu1 %v434_v15 }
  0x37   :  { %436 = vmatprep.subr.bf16.mxu1 %v533_v1  ;;  %456 = vmatpush3.bf16.msra.mxu0 %v455_v36 }
  0x38   :  { %457 = vmatprep.subr.bf16.mxu0 %v533_v1 }
  0x3a   :  { %438 = vmatpush3.bf16.msra.mxu1 %v437_v18 }
  0x3b   :  { %439 = vmatprep.subr.bf16.mxu1 %v533_v1  ;;  %459 = vmatpush3.bf16.msra.mxu0 %v458_v39 }
  0x3c   :  { %460 = vmatprep.subr.bf16.mxu0 %v533_v1 }
  0x3e   :  { %441 = vmatpush3.bf16.msra.mxu1 %v440_v21 }
  0x3f   :  { %442 = vmatprep.subr.bf16.mxu1 %v533_v1  ;;  %462 = vmatpush3.bf16.msra.mxu0 %v461_v42 }
  0x40   :  { %463 = vmatprep.subr.bf16.mxu0 %v533_v1 }
  0x42   :  { %444 = vmatpush3.bf16.msra.mxu1 %v443_v24 }
  0x43   :  { %445 = vmatprep.subr.bf16.mxu1 %v533_v1  ;;  %465 = vmatpush3.bf16.msra.mxu0 %v464_v45 }
  0x44   :  { %466 = vmatprep.subr.bf16.mxu0 %v533_v1 }
  0x46   :  { %447 = vmatpush3.bf16.msra.mxu1 %v446_v27 }
  0x47   :  { %468 = vmatpush3.bf16.msra.mxu0 %v467_v48 }
  0x48   :  { %469 = vmatprep.subr.bf16.mxu0 %v533_v1 }
  0x4b   :  { %471 = vmatpush3.bf16.msra.mxu0 %v470_v56 }
  0xfc   :  { %v114_v50 = vpop.f32.mrb[0].mxu0 }
  0xfd   :  { %v115_v51 = vadd.f32 %v309_v49, %v114_v50  ;;  %v353_v52 = vpop.f32.mrb[1].mxu0 }
  0xff   :  { %v118_v53 = vmax.f32 %v115_v51, 0.0 }
 0x101   :  { %387 = vmatmul.mubr.f32.vlgmr.msra.gmra.mrb[0].mxu1 %v118_v53 }
 0x1d4   :  { %v206_v58 = vpop.f32.mrb[0].mxu1 }
 0x1d5   :  { %v207_v59 = vadd.f32 %v311_v57, %v206_v58  ;;  %v388_v60 = vpop.f32.mrb[1].mxu1 }
 0x1d7   :  { %v210_v61 = vmax.f32 %v207_v59, 0.0 }
 0x1d9   :  { %422 = vmatmul.mubr.f32.vlgmr.msra.gmra.mrb[2].mxu0 %v210_v61 }
 0x2ac   :  { %v298_v63 = vpop.f32.mrb[2].mxu0 }
 0x2ad   :  { %v299_v0 = vadd.f32 %v312_v62, %v298_v63  ;;  %v423_v1 = vpop.f32.mrb[3].mxu0 }
 0x2af   :  { %302 = vst [vmem:[%s604_s2] sm:$0xff] %v299_v0 }
 0x2b0   :  { %307 = vsyncpa [#allocation3], 1 }
 0x2b1   :  { %308 = vsyncpa [#allocation5], 1 }

</bundles_post_ra>
